<compile_context>
chip_gen: v6e
topology: v6e:2x2x1
jax: 0.10.0
libtpu: 0.0.40
codegen_flags: <defaults>
</compile_context>

<pallas_src>
import jax
import jax.numpy as jnp
from jax.experimental import pallas as pl
from jax.experimental.pallas import tpu as pltpu

C_OUT = 3
K = 5
PAD = 2

_LANE = 128
_SUB = 8
_F32 = 4


def _round_up(x, m):
    return ((x + m - 1) // m) * m


def _make_conv_kernel(b_tile, H, W):
    HP, WP = H + 2 * PAD, W + 2 * PAD
    NC = C_OUT * W
    M = b_tile * H

    def conv_kernel(bias_ref, bmat_ref, x_ref, o_ref, xp_ref):
        # bias_ref: VMEM (1, NC)           bias replicated along W: [0, oc*W+w] = bias[oc]
        # bmat_ref: VMEM (K, WP, NC)       banded weight matrix per kernel row kh
        # x_ref   : VMEM (b_tile, H, W)    unpadded input block (channel squeezed in wrapper)
        # o_ref   : VMEM (b_tile*H, NC)    output slab, row b*H+h, col oc*W+w
        # xp_ref  : VMEM (b_tile, HP, WP)  padded staging scratch

        # Zero only the 2-wide halo strips; the interior is written exactly
        # once, below.  Done every grid step so the kernel stays correct when
        # the "parallel" grid axis is sharded across TensorCores (each core has
        # its own scratch instance).
        xp_ref[:, :PAD, :] = jnp.zeros((b_tile, PAD, WP), jnp.float32)
        xp_ref[:, PAD + H:, :] = jnp.zeros((b_tile, PAD, WP), jnp.float32)
        xp_ref[:, PAD:PAD + H, :PAD] = jnp.zeros((b_tile, H, PAD), jnp.float32)
        xp_ref[:, PAD:PAD + H, PAD + W:] = jnp.zeros((b_tile, H, PAD), jnp.float32)
        xp_ref[:, PAD:PAD + H, PAD:PAD + W] = x_ref[...].astype(jnp.float32)

        # Accumulator initialised with the broadcast bias (no trailing add).
        acc = jnp.broadcast_to(bias_ref[...], (M, NC)).astype(jnp.float32)

        # K banded matmuls on the MXU.  Each tap slab is sliced straight from
        # the scratch ref (never materialised as a whole padded value); merging
        # (b_tile, H) -> rows is layout-preserving because H % 8 == 0.
        for kh in range(K):
            lhs = xp_ref[:, kh:kh + H, :].reshape(M, WP)
            acc = acc + jnp.dot(
                lhs, bmat_ref[kh],
                preferred_element_type=jnp.float32,
                precision=jax.lax.Precision.HIGHEST)

        o_ref[...] = acc.astype(o_ref.dtype)

    return conv_kernel


def _banded_weight_mats(weight, W):
    """B[kh, j, oc*W + w] = weight[oc, 0, kh, j - w] for 0 <= j - w < K, else 0."""
    WP = W + 2 * PAD
    w_ = weight[:, 0].astype(jnp.float32)            # (C_OUT, K, K)
    rows = jnp.arange(W)
    mats = []
    for kh in range(K):
        per_oc = []
        for oc in range(C_OUT):
            m = jnp.zeros((WP, W), jnp.float32)
            for kw in range(K):
                m = m.at[rows + kw, rows].set(w_[oc, kh, kw])
            per_oc.append(m)
        mats.append(jnp.concatenate(per_oc, axis=1))  # (WP, C_OUT*W)
    return jnp.stack(mats, axis=0)                    # (K, WP, C_OUT*W)


def _vmem_bytes_per_step(b_tile, H, W):
    """Lane-padded VMEM footprint of one grid step, incl. double buffers,
    the padded scratch, constant operands and in-kernel temporaries."""
    HP, WP = H + 2 * PAD, W + 2 * PAD
    NC = C_OUT * W
    x_blk = 2 * b_tile * _round_up(H, _SUB) * _round_up(W, _LANE) * _F32
    o_blk = 2 * _round_up(b_tile * H, _SUB) * _round_up(NC, _LANE) * _F32
    xp = b_tile * _round_up(HP, _SUB) * _round_up(WP, _LANE) * _F32
    bmat = 2 * K * _round_up(WP, _SUB) * _round_up(NC, _LANE) * _F32
    bias = 2 * _SUB * _LANE * _F32
    temps = (2 * _round_up(b_tile * H, _SUB) * _round_up(NC, _LANE)      # acc + dot result
             + b_tile * _round_up(H, _SUB) * _round_up(WP, _LANE)) * _F32  # lhs tap slice
    return x_blk + o_blk + xp + bmat + bias + temps


def _vmem_budget_and_cores():
    """Generation-gated VMEM budget.  Small-VMEM parts (v7x, 64 MiB, 2 TCs)
    get tight headroom; 128 MiB parts (v5e/v6e, 1 TC) get a large budget."""
    cap = None
    try:
        cap = int(pltpu.get_tpu_info().vmem_capacity_bytes)
    except Exception:
        cap = None
    if cap is None or cap <= 0:
        cap = 64 * 1024 * 1024                       # conservative (v7x-sized) fallback
    two_tc = cap <= 80 * 1024 * 1024                 # heuristic: small-VMEM parts have 2 TCs
    if two_tc:
        budget = max(cap // 2, cap - 24 * 1024 * 1024)   # ~40 MiB on a 64 MiB part
    else:
        budget = cap - 28 * 1024 * 1024                  # ~100 MiB on 128 MiB parts
    vmem_limit = min(cap - 8 * 1024 * 1024, budget + 8 * 1024 * 1024)
    return budget, vmem_limit, two_tc


def _pick_b_tile(N, H, W, vmem_budget, two_tc):
    """Largest divisor of N that fits the budget, capped at 64 (no cross-batch
    reuse; bigger tiles only add pressure).  On 2-TC parts prefer an even
    number of >= 2 grid steps so both cores stay busy."""
    cap = min(N, 64)
    divisors = [d for d in range(1, cap + 1) if N % d == 0]
    fits = [d for d in divisors if _vmem_bytes_per_step(d, H, W) <= vmem_budget] or [1]
    if two_tc and N >= 2:
        even = [d for d in fits if (N // d) >= 2 and (N // d) % 2 == 0]
        if even:
            return max(even)
        multi = [d for d in fits if (N // d) >= 2]
        if multi:
            return max(multi)
    return max(fits)


def conv2d_1to3_k5_pallas(x_nchw, weight, bias):
    """x_nchw: (N, 1, H, W) f32; weight: (3, 1, 5, 5) f32; bias: (3,) f32.
    Returns (N, 3, H, W) f32, matching torch.nn.Conv2d(1, 3, 5, padding=2)."""
    N, C_in, H, W = x_nchw.shape
    assert C_in == 1
    # TODO(synk): support H % 8 != 0 by padding the row count in the wrapper.
    assert H % 8 == 0, "image height must be sublane-aligned (multiple of 8)"

    HP, WP = H + 2 * PAD, W + 2 * PAD
    NC = C_OUT * W

    budget, vmem_limit, two_tc = _vmem_budget_and_cores()
    b_tile = _pick_b_tile(N, H, W, budget, two_tc)
    grid = (N // b_tile,)

    bmat = _banded_weight_mats(weight.astype(jnp.float32), W)     # (K, WP, NC)
    bias_row = jnp.repeat(bias.astype(jnp.float32), W)[None, :]   # (1, NC)
    x3 = x_nchw.astype(jnp.float32).reshape(N, H, W)              # drop singleton channel

    kernel = _make_conv_kernel(b_tile, H, W)

    out2d = pl.pallas_call(
        kernel,
        out_shape=jax.ShapeDtypeStruct((N * H, NC), jnp.float32),
        grid=grid,
        in_specs=[
            pl.BlockSpec((1, NC), lambda n: (0, 0)),            # bias row (constant)
            pl.BlockSpec((K, WP, NC), lambda n: (0, 0, 0)),     # banded weights (constant)
            pl.BlockSpec((b_tile, H, W), lambda n: (n, 0, 0)),  # input images
        ],
        out_specs=pl.BlockSpec((b_tile * H, NC), lambda n: (n, 0)),
        scratch_shapes=[pltpu.VMEM((b_tile, HP, WP), jnp.float32)],
        compiler_params=pltpu.CompilerParams(
            dimension_semantics=("parallel",),
            vmem_limit_bytes=int(vmem_limit),
        ),
    )(bias_row, bmat, x3)

    # Layout plumbing back to NCHW (pure XLA reshape/transpose, no compute).
    return out2d.reshape(N, H, C_OUT, W).transpose(0, 2, 1, 3)


if __name__ == "__main__":
    key = jax.random.PRNGKey(0)
    k_x, k_w, k_b = jax.random.split(key, 3)

    # Grayscale NCHW input, consistent with the module.
    N, H, W = 2, 16, 16
    x = jax.random.normal(k_x, (N, 1, H, W), dtype=jnp.float32)

    # Deterministic PyTorch-like uniform fan-in init.
    fan_in = 1 * K * K
    bound = 1.0 / (fan_in ** 0.5)
    weight = jax.random.uniform(k_w, (C_OUT, 1, K, K), jnp.float32, -bound, bound)
    bias = jax.random.uniform(k_b, (C_OUT,), jnp.float32, -bound, bound)

    out = conv2d_1to3_k5_pallas(x, weight, bias)
    out = jax.block_until_ready(out)

    # Reference: XLA conv with same semantics as torch Conv2d(1, 3, 5, padding=2).
    ref = jax.lax.conv_general_dilated(
        x, weight, window_strides=(1, 1), padding=((PAD, PAD), (PAD, PAD)),
        dimension_numbers=("NCHW", "OIHW", "NCHW"),
        precision=jax.lax.Precision.HIGHEST,
    ) + bias[None, :, None, None]

    assert out.shape == (N, C_OUT, H, W)
    assert jnp.allclose(out, ref, atol=1e-5, rtol=1e-5)

    print("KERNEL_OK")
</pallas_src>

<mosaic_0001>
module attributes {stable_mosaic.version = 11 : i64} {
  func.func @conv_kernel(%arg0: i32, %arg1: memref<1x48xf32, #tpu.memory_space<vmem>>, %arg2: memref<5x20x48xf32, #tpu.memory_space<vmem>>, %arg3: memref<1x16x16xf32, #tpu.memory_space<vmem>>, %arg4: memref<16x48xf32, #tpu.memory_space<vmem>>, %arg5: memref<1x20x20xf32, #tpu.memory_space<vmem>>) attributes {dimension_semantics = [#tpu.dimension_semantics<parallel>], iteration_bounds = array<i64: 2>, scalar_prefetch = 0 : i64, scratch_operands = 1 : i64, tpu.core_type = #tpu.core_type<tc>, window_params = [{pipeline_mode = #tpu.pipeline_mode<synchronous>, transform_indices = @transform_0, window_bounds = array<i64: 1, 48>}, {pipeline_mode = #tpu.pipeline_mode<synchronous>, transform_indices = @transform_1, window_bounds = array<i64: 5, 20, 48>}, {transform_indices = @transform_2, window_bounds = array<i64: 1, 16, 16>}, {transform_indices = @transform_3, window_bounds = array<i64: 16, 48>}]} {
    %cst = arith.constant 0.000000e+00 : f32
    %0 = vector.broadcast %cst : f32 to vector<1x2x20xf32>
    %c0 = arith.constant 0 : index
    %c0_0 = arith.constant 0 : index
    %c0_1 = arith.constant 0 : index
    %1 = vector.load %arg5[%c0, %c0_0, %c0_1] : memref<1x20x20xf32, #tpu.memory_space<vmem>>, vector<1x2x20xf32>
    tpu.vector_store %arg5[%c0, %c0_0, %c0_1], %0 {strides = array<i32>} : memref<1x20x20xf32, #tpu.memory_space<vmem>>, vector<1x2x20xf32>,
    %cst_2 = arith.constant 0.000000e+00 : f32
    %2 = vector.broadcast %cst_2 : f32 to vector<1x2x20xf32>
    %c0_3 = arith.constant 0 : index
    %c18 = arith.constant 18 : index
    %c0_4 = arith.constant 0 : index
    %3 = vector.load %arg5[%c0_3, %c18, %c0_4] : memref<1x20x20xf32, #tpu.memory_space<vmem>>, vector<1x2x20xf32>
    tpu.vector_store %arg5[%c0_3, %c18, %c0_4], %2 {strides = array<i32>} : memref<1x20x20xf32, #tpu.memory_space<vmem>>, vector<1x2x20xf32>,
    %cst_5 = arith.constant 0.000000e+00 : f32
    %4 = vector.broadcast %cst_5 : f32 to vector<1x16x2xf32>
    %c0_6 = arith.constant 0 : index
    %c2 = arith.constant 2 : index
    %c0_7 = arith.constant 0 : index
    %5 = vector.load %arg5[%c0_6, %c2, %c0_7] : memref<1x20x20xf32, #tpu.memory_space<vmem>>, vector<1x16x2xf32>
    tpu.vector_store %arg5[%c0_6, %c2, %c0_7], %4 {strides = array<i32>} : memref<1x20x20xf32, #tpu.memory_space<vmem>>, vector<1x16x2xf32>,
    %cst_8 = arith.constant 0.000000e+00 : f32
    %6 = vector.broadcast %cst_8 : f32 to vector<1x16x2xf32>
    %c0_9 = arith.constant 0 : index
    %c2_10 = arith.constant 2 : index
    %c18_11 = arith.constant 18 : index
    %7 = vector.load %arg5[%c0_9, %c2_10, %c18_11] : memref<1x20x20xf32, #tpu.memory_space<vmem>>, vector<1x16x2xf32>
    tpu.vector_store %arg5[%c0_9, %c2_10, %c18_11], %6 {strides = array<i32>} : memref<1x20x20xf32, #tpu.memory_space<vmem>>, vector<1x16x2xf32>,
    %c0_12 = arith.constant 0 : index
    %c0_13 = arith.constant 0 : index
    %c0_14 = arith.constant 0 : index
    %8 = vector.load %arg3[%c0_12, %c0_13, %c0_14] : memref<1x16x16xf32, #tpu.memory_space<vmem>>, vector<1x16x16xf32>
    %c0_15 = arith.constant 0 : index
    %c2_16 = arith.constant 2 : index
    %c2_17 = arith.constant 2 : index
    %9 = vector.load %arg5[%c0_15, %c2_16, %c2_17] : memref<1x20x20xf32, #tpu.memory_space<vmem>>, vector<1x16x16xf32>
    tpu.vector_store %arg5[%c0_15, %c2_16, %c2_17], %8 {strides = array<i32>} : memref<1x20x20xf32, #tpu.memory_space<vmem>>, vector<1x16x16xf32>,
    %c0_18 = arith.constant 0 : index
    %c0_19 = arith.constant 0 : index
    %10 = vector.load %arg1[%c0_18, %c0_19] : memref<1x48xf32, #tpu.memory_space<vmem>>, vector<1x48xf32>
    %11 = vector.shape_cast %10 : vector<1x48xf32> to vector<1x48xf32>
    %12 = vector.broadcast %11 : vector<1x48xf32> to vector<16x48xf32>
    %c0_20 = arith.constant 0 : index
    %c0_21 = arith.constant 0 : index
    %c0_22 = arith.constant 0 : index
    %13 = vector.load %arg5[%c0_20, %c0_21, %c0_22] : memref<1x20x20xf32, #tpu.memory_space<vmem>>, vector<1x16x20xf32>
    %14 = vector.shape_cast %13 : vector<1x16x20xf32> to vector<16x20xf32>
    %c0_23 = arith.constant 0 : index
    %c0_24 = arith.constant 0 : index
    %c0_25 = arith.constant 0 : index
    %15 = vector.load %arg2[%c0_23, %c0_24, %c0_25] : memref<5x20x48xf32, #tpu.memory_space<vmem>>, vector<1x20x48xf32>
    %16 = vector.shape_cast %15 : vector<1x20x48xf32> to vector<20x48xf32>
    %cst_26 = arith.constant dense<0.000000e+00> : vector<16x48xf32>
    %17 = tpu.matmul %14, %16, %cst_26 {dimension_numbers = #tpu.dot_dimension_numbers<[1], [0], [0], [1], [0, 0, 1, 1], [], []>, precision = #tpu.contract_precision<fp32>} : vector<16x20xf32>, vector<20x48xf32>, vector<16x48xf32> -> vector<16x48xf32>
    %18 = arith.addf %12, %17 : vector<16x48xf32>
    %c0_27 = arith.constant 0 : index
    %c1 = arith.constant 1 : index
    %c0_28 = arith.constant 0 : index
    %19 = vector.load %arg5[%c0_27, %c1, %c0_28] : memref<1x20x20xf32, #tpu.memory_space<vmem>>, vector<1x16x20xf32>
    %20 = vector.shape_cast %19 : vector<1x16x20xf32> to vector<16x20xf32>
    %c1_29 = arith.constant 1 : index
    %c0_30 = arith.constant 0 : index
    %c0_31 = arith.constant 0 : index
    %21 = vector.load %arg2[%c1_29, %c0_30, %c0_31] : memref<5x20x48xf32, #tpu.memory_space<vmem>>, vector<1x20x48xf32>
    %22 = vector.shape_cast %21 : vector<1x20x48xf32> to vector<20x48xf32>
    %cst_32 = arith.constant dense<0.000000e+00> : vector<16x48xf32>
    %23 = tpu.matmul %20, %22, %cst_32 {dimension_numbers = #tpu.dot_dimension_numbers<[1], [0], [0], [1], [0, 0, 1, 1], [], []>, precision = #tpu.contract_precision<fp32>} : vector<16x20xf32>, vector<20x48xf32>, vector<16x48xf32> -> vector<16x48xf32>
    %24 = arith.addf %18, %23 : vector<16x48xf32>
    %c0_33 = arith.constant 0 : index
    %c2_34 = arith.constant 2 : index
    %c0_35 = arith.constant 0 : index
    %25 = vector.load %arg5[%c0_33, %c2_34, %c0_35] : memref<1x20x20xf32, #tpu.memory_space<vmem>>, vector<1x16x20xf32>
    %26 = vector.shape_cast %25 : vector<1x16x20xf32> to vector<16x20xf32>
    %c2_36 = arith.constant 2 : index
    %c0_37 = arith.constant 0 : index
    %c0_38 = arith.constant 0 : index
    %27 = vector.load %arg2[%c2_36, %c0_37, %c0_38] : memref<5x20x48xf32, #tpu.memory_space<vmem>>, vector<1x20x48xf32>
    %28 = vector.shape_cast %27 : vector<1x20x48xf32> to vector<20x48xf32>
    %cst_39 = arith.constant dense<0.000000e+00> : vector<16x48xf32>
    %29 = tpu.matmul %26, %28, %cst_39 {dimension_numbers = #tpu.dot_dimension_numbers<[1], [0], [0], [1], [0, 0, 1, 1], [], []>, precision = #tpu.contract_precision<fp32>} : vector<16x20xf32>, vector<20x48xf32>, vector<16x48xf32> -> vector<16x48xf32>
    %30 = arith.addf %24, %29 : vector<16x48xf32>
    %c0_40 = arith.constant 0 : index
    %c3 = arith.constant 3 : index
    %c0_41 = arith.constant 0 : index
    %31 = vector.load %arg5[%c0_40, %c3, %c0_41] : memref<1x20x20xf32, #tpu.memory_space<vmem>>, vector<1x16x20xf32>
    %32 = vector.shape_cast %31 : vector<1x16x20xf32> to vector<16x20xf32>
    %c3_42 = arith.constant 3 : index
    %c0_43 = arith.constant 0 : index
    %c0_44 = arith.constant 0 : index
    %33 = vector.load %arg2[%c3_42, %c0_43, %c0_44] : memref<5x20x48xf32, #tpu.memory_space<vmem>>, vector<1x20x48xf32>
    %34 = vector.shape_cast %33 : vector<1x20x48xf32> to vector<20x48xf32>
    %cst_45 = arith.constant dense<0.000000e+00> : vector<16x48xf32>
    %35 = tpu.matmul %32, %34, %cst_45 {dimension_numbers = #tpu.dot_dimension_numbers<[1], [0], [0], [1], [0, 0, 1, 1], [], []>, precision = #tpu.contract_precision<fp32>} : vector<16x20xf32>, vector<20x48xf32>, vector<16x48xf32> -> vector<16x48xf32>
    %36 = arith.addf %30, %35 : vector<16x48xf32>
    %c0_46 = arith.constant 0 : index
    %c4 = arith.constant 4 : index
    %c0_47 = arith.constant 0 : index
    %37 = vector.load %arg5[%c0_46, %c4, %c0_47] : memref<1x20x20xf32, #tpu.memory_space<vmem>>, vector<1x16x20xf32>
    %38 = vector.shape_cast %37 : vector<1x16x20xf32> to vector<16x20xf32>
    %c4_48 = arith.constant 4 : index
    %c0_49 = arith.constant 0 : index
    %c0_50 = arith.constant 0 : index
    %39 = vector.load %arg2[%c4_48, %c0_49, %c0_50] : memref<5x20x48xf32, #tpu.memory_space<vmem>>, vector<1x20x48xf32>
    %40 = vector.shape_cast %39 : vector<1x20x48xf32> to vector<20x48xf32>
    %cst_51 = arith.constant dense<0.000000e+00> : vector<16x48xf32>
    %41 = tpu.matmul %38, %40, %cst_51 {dimension_numbers = #tpu.dot_dimension_numbers<[1], [0], [0], [1], [0, 0, 1, 1], [], []>, precision = #tpu.contract_precision<fp32>} : vector<16x20xf32>, vector<20x48xf32>, vector<16x48xf32> -> vector<16x48xf32>
    %42 = arith.addf %36, %41 : vector<16x48xf32>
    %c0_52 = arith.constant 0 : index
    %c0_53 = arith.constant 0 : index
    %43 = vector.load %arg4[%c0_52, %c0_53] : memref<16x48xf32, #tpu.memory_space<vmem>>, vector<16x48xf32>
    tpu.vector_store %arg4[%c0_52, %c0_53], %42 {strides = array<i32>} : memref<16x48xf32, #tpu.memory_space<vmem>>, vector<16x48xf32>,
    return
  }
  func.func @transform_0(%arg0: i32) -> (i32, i32) {
    %c0_i32 = arith.constant 0 : i32
    %c0_i32_0 = arith.constant 0 : i32
    %c0_i32_1 = arith.constant 0 : i32
    return %c0_i32, %c0_i32_0 : i32, i32
  }
  func.func @transform_1(%arg0: i32) -> (i32, i32, i32) {
    %c0_i32 = arith.constant 0 : i32
    %c0_i32_0 = arith.constant 0 : i32
    %c0_i32_1 = arith.constant 0 : i32
    %c0_i32_2 = arith.constant 0 : i32
    return %c0_i32, %c0_i32_0, %c0_i32_1 : i32, i32, i32
  }
  func.func @transform_2(%arg0: i32) -> (i32, i32, i32) {
    %c0_i32 = arith.constant 0 : i32
    %c0_i32_0 = arith.constant 0 : i32
    %c0_i32_1 = arith.constant 0 : i32
    return %arg0, %c0_i32, %c0_i32_0 : i32, i32, i32
  }
  func.func @transform_3(%arg0: i32) -> (i32, i32) {
    %c0_i32 = arith.constant 0 : i32
    %c0_i32_0 = arith.constant 0 : i32
    return %arg0, %c0_i32 : i32, i32
  }
}

</mosaic_0001>

<bundles_post_ra>
// kernel: tpu_custom_call.1
= control target key start
LH: loop header
LB: loop body
LE: loop exit
PB: predicated region body
PF: predicated region fallthrough
CT: control target
= control target key end

     0   :  { %s4343_s0 = inlined_call_operand.hbm [shape: f32[1,48], index: 0, kind: input, shape index: {}]   ;;  %s4344_s1 = inlined_call_operand.hbm [shape: f32[5,20,48], index: 1, kind: input, shape index: {}]   ;;  %s4345_s2 = inlined_call_operand.hbm [shape: f32[2,16,16], index: 2, kind: input, shape index: {}]   ;;  %s4346_s3 = inlined_call_operand.hbm [shape: f32[32,48], index: 3, kind: output, shape index: {}]  }
   0x1   :  { %4351 = sst [smem:[#allocation14_spill]] %s4343_s0 }
   0x2   :  { %8 = vsyncpa [#allocation4], 0 }
   0x3   :  { %9 = vsyncpa [#allocation7], 0 }
   0x4   :  { %10 = vsyncpa [#allocation5], 0 }
   0x5   :  { %12 = vsyncpa [#allocation5 + $0x1], 0  ;;  %s3712_s12 = smov 0   ;;  %s3714_s13 = smov 0  }
   0x6   :  { %s3716_s14 = smov 0   ;;  %s3718_s15 = smov 0  }
   0x7 LB: > { %s3733_s16 = sadd.s32 4294967295, %s3680_s15   ;;  %s3014_s17 = sadd.s32 4294967294, %s3680_s15   ;;  %s3680_s15 = sphi %s3718_s15, %s4373_s15   ;;  %s3676_s14 = sphi %s3716_s14, %s4372_s14   ;;  %s3672_s13 = sphi %s3714_s13, %s4371_s13   ;;  %s3668_s12 = sphi %s3712_s12, %s4370_s12  }
   0x8   : > { %s3737_s18 = sadd.s32 1, %s3680_s15   ;;  %s67_s19 = sadd.s32 1, %s3676_s14 }
   0x9   : > { %s64_s20 = ssub.s32 %s3680_s15, %s3737_s18  ;;  %p74_p0 = scmp.ne.s32.totalorder %s3676_s14, %s3672_s13 }
   0xa   : > { %p65_p1 = scmp.eq.s32.totalorder %s64_s20, 0  ;;  %p75_p2 = scmp.eq.s32.totalorder %s3680_s15, 0 }
   0xb   : > { %p80_p3 = scmp.ne.s32.totalorder %s3672_s13, %s3668_s12  ;;  %p4347_p4 = scmp.eq.s32.totalorder %s3733_s16, 0 }
   0xc   : > { %s3749_s21 = scalar_select %p65_p1, %s3676_s14, %s67_s19  }
   0xd   : > { %p3751_p5 = por %p75_p2, %p74_p0  ;;  %p3757_p6 = por %p4347_p4, %p80_p3 }
   0xe   : > { %p104_p7 = scmp.eq.s32.totalorder %s3733_s16, 1  ;;  %p110_p8 = scmp.eq.s32.totalorder %s3014_s17, 1 }
   0xf   : > { %s4353_s23 = scalar_select %p3757_p6, 1, 0 }
  0x10   : > { %p3015_p9 = scmp.ge.s32.totalorder %s3680_s15, 1  ;;  %p117_p10 = scmp.lt.s32.totalorder %s3680_s15, 3 }
  0x11   : > { %p3764_p11 = por %p104_p7, %p74_p0  ;;  %p3768_p12 = por %p110_p8, %p80_p3 }
  0x12   : > { %p3772_p13 = pnand %p3015_p9, %p117_p10  ;;  %s3682_s27 = smov [#allocation3]  }
  0x13   : > { %s4354_s24 = scalar_select %p3764_p11, 1, 0 }
  0x14   : > { %s4355_s25 = scalar_select %p3768_p12, 1, 0 }
  0x15   : > { %s4356_s26 = scalar_select %p3772_p13, 1, 0 }
  0x16   : > { %p3467_p2 = pneg %p3772_p13  ;;  %s130_s28 = sshll.u32 %s3682_s27, 4  ;;  %s131_s28 = int_to_ptr.vmem [resolvable:$true] %s130_s28 }
  0x17   : > { %p3484_p4 = scmp.lt.s32.totalorder %s3680_s15, 2  ;;  %p4357_p0 = scmp.eq.s32.totalorder %s3733_s16, 0 }
  0x18   : > { %s3683_s4 = smov [#allocation6]   ;;  %s3539_s6 = scalar_lea.vmem %s131_s28, 16 }
  0x19   : > { %p3782_p7 = pnand %p3467_p2, %p4357_p0  ;;  %p3788_p3 = pnand %p3484_p4, %p3751_p5 }
  0x1a   : > { %s140_s5 = sshll.u32 %s3683_s4, 4  ;;  %p3540_p9 = scmp.ne.s32.totalorder %s131_s28, %s3539_s6  ;;  %s141_s5 = int_to_ptr.vmem [resolvable:$true] %s140_s5 }
  0x1b   : > { %p3530_p8 = pneg %p3782_p7  ;;  %s3546_s7 = scalar_lea.vmem %s131_s28, 32 }
  0x1c   : > { %p3547_p0 = scmp.lt.s32.totalorder %s131_s28, %s131_s28  ;;  %p3548_p1 = scmp.lt.s32.totalorder %s3546_s7, %s3539_s6 }
  0x1d   : > { %p3542_p10 = pnand %p3540_p9, %p3530_p8 }
  0x1e   : > { %p3549_p12 = por %p3548_p1, %p3547_p0 }
  0x1f   : > { %p3543_p2 = pneg %p3542_p10 }
  0x21   : > { %p3550_p11 = pnand %p3549_p12, %p3543_p2 }
  0x23   : > { %3553 = shalt.err (!%p3550_p11)
}
  0x24   : > { %s4360_s0 = sld [smem:[#allocation14_spill]]  ;;  %s154_s10 = sand.u32 1, %s3680_s15  }
  0x25   : > { %s3565_s11 = scalar_lea.vmem %s141_s5, 1920  ;;  %p3573_p10 = scmp.lt.s32.totalorder %s141_s5, %s141_s5 }
  0x26   : > { %p3566_p4 = scmp.ne.s32.totalorder %s141_s5, %s3565_s11  ;;  %p3574_p6 = scmp.lt.s32.totalorder %s3565_s11, %s3565_s11 }
  0x28   : > { %p3568_p5 = pnand %p3566_p4, %p3530_p8  ;;  %p3575_p1 = por %p3574_p6, %p3573_p10 }
  0x2a   : > { %3470 = dma.hbm_to_vmem [thread:$0]  (!%p3782_p7), %s4360_s0, 16, %s131_s28, [#allocation4]  }
  0x2b   : > { %p3569_p9 = pneg %p3568_p5 }
  0x2d   : > { %p3576_p12 = pnand %p3575_p1, %p3569_p9 }
  0x2f   : > { %3579 = shalt.err (!%p3576_p12)
}
  0x30   : > { %s3684_s17 = smov 128   ;;  %s3685_s19 = smov 8  }
  0x31   : > { %3473 = dma.hbm_to_vmem [thread:$0]  (!%p3782_p7), %s4344_s1, 1920, %s141_s5, [#allocation7], %s3684_s17, %s3684_s17, %s3685_s19  }
  0x32   : > { %s156_s27 = sand.u32 1, %s3676_s14   ;;  %s3033_s4 = sshll.u32 %s3680_s15, 8 }
  0x33   : > { %s3019_s28 = sshll.u32 %s156_s27, 4  ;;  %s3819_s8 = scalar_lea.hbm %s4345_s2, %s3033_s4 }
  0x34   : > { %s158_s9 = scalar_lea.vmem [#allocation8], %s3019_s28  ;;  %s3823_s11 = scalar_lea.sflag [#allocation4], %s154_s10 }
  0x35   : > { %s165_s29 = sshll.u32 %s158_s9, 4  ;;  %s3580_s0 = scalar_lea.hbm %s3819_s8, 256  ;;  %s3821_s29 = int_to_ptr.vmem [resolvable:$true] %s165_s29 }
  0x36   : > { %p3581_p6 = scmp.ne.s32.totalorder %s3819_s8, %s3580_s0  ;;  %p3582_p11 = pneg %p3788_p3 }
  0x37   : > { %s3585_s22 = scalar_lea.hbm %s4345_s2, 512  ;;  %p3586_p2 = scmp.lt.s32.totalorder %s3819_s8, %s4345_s2 }
  0x38   : > { %p3583_p7 = pnand %p3582_p11, %p3581_p6  ;;  %p3587_p0 = scmp.lt.s32.totalorder %s3585_s22, %s3580_s0 }
  0x3a   : > { %p3584_p8 = pneg %p3583_p7  ;;  %p3588_p4 = por %p3587_p0, %p3586_p2 }
  0x3c   : > { %p3589_p5 = pnand %p3588_p4, %p3584_p8 }
  0x3e   : > { %3592 = shalt.err (!%p3589_p5)
}
  0x3f   : > { %s3593_s10 = scalar_lea.vmem %s3821_s29, 256  ;;  %s3686_s28 = smov [#allocation8]  }
  0x40   : > { %p3594_p9 = scmp.ne.s32.totalorder %s3821_s29, %s3593_s10  ;;  %s3598_s6 = sshll.u32 %s3686_s28, 4  ;;  %s3599_s6 = int_to_ptr.vmem [resolvable:$false] %s3598_s6 }
  0x41   : > { %s3600_s7 = scalar_lea.vmem %s3599_s6, 512  ;;  %p3601_p12 = scmp.lt.s32.totalorder %s3821_s29, %s3599_s6 }
  0x42   : > { %p3596_p10 = pnand %p3594_p9, %p3582_p11  ;;  %p3602_p6 = scmp.lt.s32.totalorder %s3600_s7, %s3593_s10 }
  0x44   : > { %p3597_p1 = pneg %p3596_p10  ;;  %p3603_p7 = por %p3602_p6, %p3601_p12 }
  0x46   : > { %p3604_p13 = pnand %p3603_p7, %p3597_p1 }
  0x48   : > { %3607 = shalt.err (!%p3604_p13)
}
  0x49   : > { %3477 = dma.hbm_to_vmem [thread:$0]  (!%p3788_p3), %s3819_s8, 256, %s3821_s29, %s3823_s11, %s3684_s17, %s3684_s17, %s3685_s19  }
  0x4a   : > { %p4361_p11 = scmp.ne.s32.totalorder %s4356_s26, 0 }
  0x4b   : > { %p4362_p8 = scmp.eq.s32.totalorder (!%p4361_p11), %s3733_s16, 0 }
  0x4c   : > { %177 = sbr.rel (%p4361_p11) target bundleno = 554 (0x22a), region = 32 }
  0x51   : > { %3651 = dma.done.wait (%p4362_p8), [#allocation4], 16   ;;  %p4363_p2 = pmov %p4362_p8 }
  0x53   : > { %3653 = vsyncadd (%p4363_p2), [#allocation4], 4294967280  ;;  %p4364_p13 = pmov %p4363_p2 }
  0x54   : > { %p4365_p0 = pmov %p4363_p2 }
  0x55   : > { %3655 = dma.done.wait (%p4364_p13), [#allocation7], 1920  }
  0x56   : > { %3657 = vsyncadd (%p4365_p0), [#allocation7], 4294965376  ;;  %s187_s0 = sand.u32 1, %s3733_s16   ;;  %s189_s30 = sand.u32 1, %s3672_s13  }
  0x57   : > { %s3861_s26 = sshll.u32 %s189_s30, 4  ;;  %s188_s17 = scalar_lea.sflag [#allocation4], %s187_s0 }
  0x58   : > { %s191_s19 = scalar_lea.vmem [#allocation8], %s3861_s26  ;;  %p4366_p3 = scmp.ne.s32.totalorder %s4353_s23, 0 }
  0x5a   : > { %3659 = dma.done.wait (%p4366_p3), %s188_s17, 256  }
  0x5b   : > { %3661 = vsyncadd (%p4366_p3), %s188_s17, 4294967040  ;;  %vm215_vm0 = vcmask 156672   ;;  %vm218_vm1 = vcmask 15360   ;;  %vm221_vm2 = vcmask 162960   ;;  %v3687_v0 = vmov 0.0   ;;  %v224_v1 = vld [vmem:[%s191_s19] sm:$0xff] }
  0x5c   : > { %216 = vst.msk [vmem:[#allocation2] sm:$0x3] %vm215_vm0, %v3687_v0  ;;  %217 = vst.msk [vmem:[#allocation2 + $0x12] sm:$0x3] %vm215_vm0, %v3687_v0  ;;  %vm256_vm3 = vcmask 1043456   ;;  %s3688_s8 = smov 2  }
  0x5d   : > { %219 = vst.msk [vmem:[#allocation2 + $0x2] sm:$0xff] %vm218_vm1, %v3687_v0  ;;  %220 = vst.msk [vmem:[#allocation2 + $0xa] sm:$0xff] %vm218_vm1, %v3687_v0  ;;  %v248_v2 = vld [vmem:[#allocation6 + $0x10] sm:$0xf]  ;;  %228 = vrot.lane.b32.xlu0 %v224_v1, %s3688_s8  ;;  %v247_v4 = vld [vmem:[#allocation6 + $0x8] sm:$0xff]  ;;  %vm234_vm4 = vcmask 146448  }
  0x5e   : > { %222 = vst.msk [vmem:[#allocation2 + $0x2] sm:$0xff] %vm221_vm2, %v3687_v0  ;;  %223 = vst.msk [vmem:[#allocation2 + $0xa] sm:$0xff] %vm221_vm2, %v3687_v0  ;;  %v258_v3 = vsel %vm256_vm3, %v248_v2, 0  ;;  %v246_v5 = vld [vmem:[#allocation6] sm:$0xff]  ;;  %v3871_v8 = vand.u32 4294901760, %v247_v4  ;;  %vm249_vm5 = vcmask 162816  }
  0x5f   : > { %v225_v6 = vld [vmem:[%s191_s19 + $0x8] sm:$0xff]  ;;  %v3869_v7 = vand.u32 4294901760, %v258_v3  ;;  %v3873_v9 = vand.u32 4294901760, %v246_v5  ;;  %v782_v23 = vld [vmem:[#allocation6 + $0x28] sm:$0xf]  ;;  %v780_v34 = vld [vmem:[#allocation6 + $0x18] sm:$0xff] }
  0x60   : > { %v3879_v11 = vsub.f32 %v247_v4, %v3871_v8  ;;  %v790_v25 = vsel %vm256_vm3, %v782_v23, 0  ;;  %v781_v29 = vld [vmem:[#allocation6 + $0x20] sm:$0xff]  ;;  %v3923_v39 = vand.u32 4294901760, %v780_v34  ;;  %s3034_s23 = sshll.u32 %s3733_s16, 8  ;;  %s213_s9 = scalar_lea.vmem [#allocation9], %s3861_s26  ;;  %vm2905_vm6 = vcmask 392192  }
  0x61   : > { %v3876_v10 = vsub.f32 %v258_v3, %v3869_v7  ;;  %v3882_v12 = vsub.f32 %v246_v5, %v3873_v9  ;;  %3185 = vmatprep.subr.mxu0 %v3869_v7  ;;  %230 = vrot.lane.b32.xlu0 %v225_v6, %s3688_s8  ;;  %v3909_v28 = vand.u32 4294901760, %v790_v25  ;;  %v3915_v33 = vand.u32 4294901760, %v781_v29  ;;  %v1314_v61 = vld [vmem:[#allocation6 + $0x40] sm:$0xf]  ;;  %v1313_v5 = vld [vmem:[#allocation6 + $0x38] sm:$0xff]  ;;  %s2922_s29 = sshll.u32 %s213_s9, 4  ;;  %s4296_s20 = scalar_lea.hbm %s4346_s3, %s3034_s23  ;;  %s4298_s29 = int_to_ptr.vmem [resolvable:$true] %s2922_s29 }
  0x62   : > { %3186 = vmatpush3.msra.mxu0 %v3869_v7  ;;  %v3890_v14 = vand.u32 4294901760, %v3879_v11  ;;  %v3937_v47 = vsub.f32 %v780_v34, %v3923_v39  ;;  %v1322_v0 = vsel %vm256_vm3, %v1314_v61, 0  ;;  %s4302_s16 = scalar_lea.sflag [#allocation5], %s189_s30  ;;  %s3608_s22 = scalar_lea.vmem %s4298_s29, 256 }
  0x63   : > { %v3887_v13 = vand.u32 4294901760, %v3876_v10  ;;  %v3893_v15 = vand.u32 4294901760, %v3882_v12  ;;  %3187 = vmatprep.subr.mxu0 %v3871_v8  ;;  %v3919_v36 = vsub.f32 %v790_v25, %v3909_v28  ;;  %v3928_v42 = vsub.f32 %v781_v29, %v3915_v33  ;;  %p3609_p4 = scmp.ne.s32.totalorder %s4298_s29, %s3608_s22  ;;  %p4367_p5 = scmp.ne.s32.totalorder %s4354_s24, 0 }
  0x64   : > { %3188 = vmatpush3.msra.mxu0 %v3871_v8  ;;  %v385_v17 = vsub.f32 %v3879_v11, %v3890_v14  ;;  %v3953_v54 = vand.u32 4294901760, %v3937_v47  ;;  %v3984_v4 = vand.u32 4294901760, %v1322_v0  ;;  %s3689_s27 = smov [#allocation9]  }
  0x65   : > { %v378_v16 = vsub.f32 %v3876_v10, %v3887_v13  ;;  %v392_v18 = vsub.f32 %v3882_v12, %v3893_v15  ;;  %3189 = vmatprep.subr.mxu0 %v3873_v9  ;;  %v3932_v43 = vand.u32 4294901760, %v3919_v36  ;;  %v3942_v50 = vand.u32 4294901760, %v3928_v42  ;;  %p3610_p9 = pnand %p3609_p4, %p4367_p5  ;;  %s3612_s4 = sshll.u32 %s3689_s27, 4  ;;  %s3613_s4 = int_to_ptr.vmem [resolvable:$false] %s3612_s4 }
  0x66   : > { %3190 = vmatpush3.msra.mxu0 %v3873_v9  ;;  %v386_v20 = vand.u32 4294901760, %v385_v17  ;;  %v924_v59 = vsub.f32 %v3937_v47, %v3953_v54  ;;  %s3614_s10 = scalar_lea.vmem %s3613_s4, 512  ;;  %p3615_p1 = scmp.lt.s32.totalorder %s4298_s29, %s3613_s4 }
  0x67   : > { %v379_v19 = vand.u32 4294901760, %v378_v16  ;;  %3203 = vmatprep.subr.mxu0 %v3876_v10  ;;  %v393_v21 = vand.u32 4294901760, %v392_v18  ;;  %v910_v51 = vsub.f32 %v3919_v36, %v3932_v43  ;;  %v917_v56 = vsub.f32 %v3928_v42, %v3942_v50  ;;  %p3611_p10 = pneg %p3610_p9  ;;  %p3616_p12 = scmp.lt.s32.totalorder %s3614_s10, %s3608_s22 }
  0x68   : > { %v925_v1 = vand.u32 4294901760, %v924_v59 }
  0x69   : > { %3194 = vmatprep.subr.mxu1 %v379_v19  ;;  %v911_v57 = vand.u32 4294901760, %v910_v51  ;;  %v918_v62 = vand.u32 4294901760, %v917_v56  ;;  %p3617_p6 = por %p3616_p12, %p3615_p1 }
  0x6a   : > { %3195 = vmatpush3.msra.mxu1 %v379_v19 }
  0x6b   : > { %3196 = vmatprep.subr.mxu1 %v386_v20  ;;  %p3618_p7 = pnand %p3617_p6, %p3611_p10 }
  0x6c   : > { %3197 = vmatpush3.msra.mxu1 %v386_v20 }
  0x6d   : > { %3198 = vmatprep.subr.mxu1 %v393_v21 }
  0x6e   : > { %3199 = vmatpush3.msra.mxu1 %v393_v21 }
  0x6f   : > { %3212 = vmatprep.subr.mxu1 %v3869_v7 }
  0xcf   : > { %v229_v22 = vpop.permute.xlu0 %228 }
  0xd0   : > { %235 = vst.msk [vmem:[#allocation2 + $0x2] sm:$0xff] %vm234_vm4, %v229_v22 }
  0xd3   : > { %v231_v24 = vpop.permute.xlu0 %230 }
  0xd4   : > { %236 = vst.msk [vmem:[#allocation2 + $0xa] sm:$0xff] %vm234_vm4, %v231_v24 }
  0xd7   : > { %v244_v26 = vld [vmem:[#allocation2] sm:$0xff] }
  0xd8   : > { %v251_v27 = vsel %vm249_vm5, %v244_v26, 0  ;;  %v777_v44 = vld [vmem:[#allocation2 + $0x1] sm:$0xff] }
  0xd9   : > { %v3911_v30 = vand.u32 4294901760, %v251_v27  ;;  %v784_v49 = vsel %vm249_vm5, %v777_v44, 0  ;;  %v1309_v16 = vld [vmem:[#allocation2 + $0x2] sm:$0xff] }
  0xda   : > { %v3950_v53 = vand.u32 4294901760, %v784_v49  ;;  %v1316_v18 = vsel %vm249_vm5, %v1309_v16, 0 }
  0xdb   : > { %3200 = vmatprep.mubr.f32.mxu1 %v3911_v30  ;;  %v245_v31 = vld [vmem:[#allocation2 + $0x8] sm:$0xff]  ;;  %v329_v32 = vsub.f32 %v251_v27, %v3911_v30  ;;  %v4032_v22 = vand.u32 4294901760, %v1316_v18 }
  0xdc   : > { %v254_v35 = vsel %vm249_vm5, %v245_v31, 0  ;;  %v778_v55 = vld [vmem:[#allocation2 + $0x9] sm:$0xff]  ;;  %v3967_v60 = vsub.f32 %v784_v49, %v3950_v53 }
  0xdd   : > { %v3921_v37 = vand.u32 4294901760, %v254_v35  ;;  %v330_v38 = vand.u32 4294901760, %v329_v32  ;;  %v787_v58 = vsel %vm249_vm5, %v778_v55, 0  ;;  %v1310_v24 = vld [vmem:[#allocation2 + $0xa] sm:$0xff]  ;;  %v4051_v29 = vsub.f32 %v1316_v18, %v4032_v22 }
  0xde   : > { %v3972_v63 = vand.u32 4294901760, %v787_v58  ;;  %v862_v2 = vand.u32 4294901760, %v3967_v60  ;;  %v1319_v27 = vsel %vm249_vm5, %v1310_v24, 0  ;;  %v1841_v49 = vld [vmem:[#allocation2 + $0x3] sm:$0xff] }
  0xdf   : > { %v339_v40 = vsub.f32 %v254_v35, %v3921_v37  ;;  %3201 = vmatmul.mubr.f32.vlgmr.msra.gmra.mxu1 %v3921_v37  ;;  %v331_v41 = vsub.f32 %v329_v32, %v330_v38  ;;  %v1394_v35 = vand.u32 4294901760, %v4051_v29  ;;  %v1848_v51 = vsel %vm249_vm5, %v1841_v49, 0  ;;  %v2373_v18 = vld [vmem:[#allocation2 + $0x4] sm:$0xff] }
  0xe0   : > { %3213 = vmatpush3.msra.mxu1 %v3869_v7  ;;  %3218 = vmatprep.mubr.f32.mxu1 %v330_v38  ;;  %v3982_v3 = vsub.f32 %v787_v58, %v3972_v63  ;;  %v863_v6 = vsub.f32 %v3967_v60, %v862_v2  ;;  %v1845_v38 = vld [vmem:[#allocation6 + $0x50] sm:$0xff]  ;;  %v4117_v55 = vand.u32 4294901760, %v1848_v51 }
  0xe1   : > { %3214 = vmatprep.subr.mxu1 %v3871_v8  ;;  %v332_v45 = vand.u32 4294901760, %v331_v41  ;;  %v340_v46 = vand.u32 4294901760, %v339_v40  ;;  %v1844_v41 = vld [vmem:[#allocation6 + $0x48] sm:$0xff] }
  0xe2   : > { %3215 = vmatpush3.msra.mxu1 %v3871_v8 }
  0xe3   : > { %3216 = vmatprep.subr.mxu1 %v3873_v9  ;;  %3191 = vmatprep.mubr.f32.mxu0 %v332_v45  ;;  %v341_v48 = vsub.f32 %v339_v40, %v340_v46  ;;  %v4086_v45 = vand.u32 4294901760, %v1844_v41 }
  0xe4   : > { %3217 = vmatpush3.msra.mxu1 %v3873_v9 }
  0xe5   : > { %3219 = vmatmul.mubr.f32.vlgmr.msra.gmra.mxu1 %v340_v46  ;;  %3230 = vmatprep.subr.mxu1 %v3869_v7  ;;  %v342_v52 = vand.u32 4294901760, %v341_v48 }
  0xe6   : > { %3231 = vmatpush3.msra.mxu1 %v3869_v7  ;;  %3236 = vmatprep.mubr.f32.mxu1 %v3911_v30  ;;  %v3990_v7 = vand.u32 4294901760, %v1313_v5 }
  0xe7   : > { %3232 = vmatprep.subr.mxu1 %v3871_v8  ;;  %3192 = vmatmul.mubr.f32.vlgmr.msra.gmra.mxu0 %v342_v52 }
  0xe8   : > { %3204 = vmatpush3.msra.mxu0 %v3876_v10  ;;  %3233 = vmatpush3.msra.mxu1 %v3871_v8  ;;  %v1312_v8 = vld [vmem:[#allocation6 + $0x30] sm:$0xff]  ;;  %v3996_v10 = vsub.f32 %v1322_v0, %v3984_v4 }
  0xe9   : > { %3205 = vmatprep.subr.mxu0 %v3879_v11  ;;  %3209 = vmatprep.mubr.f32.mxu0 %v329_v32  ;;  %v4056_v32 = vand.u32 4294901760, %v1319_v27 }
  0xea   : > { %3234 = vmatprep.subr.mxu1 %v3873_v9  ;;  %3206 = vmatpush3.msra.mxu0 %v3879_v11  ;;  %v864_v11 = vand.u32 4294901760, %v863_v6 }
  0xeb   : > { %3235 = vmatpush3.msra.mxu1 %v3873_v9  ;;  %3207 = vmatprep.subr.mxu0 %v3882_v12  ;;  %v872_v9 = vand.u32 4294901760, %v3982_v3 }
  0xec   : > { %3237 = vmatmul.mubr.f32.vlgmr.msra.gmra.mxu1 %v3921_v37  ;;  %3248 = vmatprep.subr.mxu1 %v911_v57 }
  0xed   : > { %3208 = vmatpush3.msra.mxu0 %v3882_v12  ;;  %3249 = vmatpush3.msra.mxu1 %v911_v57  ;;  %v4001_v12 = vand.u32 4294901760, %v1312_v8  ;;  %v1842_v57 = vld [vmem:[#allocation2 + $0xb] sm:$0xff] }
  0xee   : > { %3254 = vmatprep.mubr.f32.mxu1 %v3950_v53  ;;  %3210 = vmatmul.mubr.f32.vlgmr.msra.gmra.mxu0 %v339_v40  ;;  %v4075_v40 = vand.u32 4294901760, %v1845_v38 }
  0xef   : > { %3221 = vmatprep.subr.mxu0 %v3887_v13  ;;  %3250 = vmatprep.subr.mxu1 %v918_v62  ;;  %v4018_v17 = vsub.f32 %v1312_v8, %v4001_v12 }
  0xf0   : > { %3222 = vmatpush3.msra.mxu0 %v3887_v13  ;;  %3227 = vmatprep.mubr.f32.mxu0 %v3911_v30  ;;  %v4006_v13 = vsub.f32 %v1313_v5, %v3990_v7  ;;  %v1846_v30 = vld [vmem:[#allocation6 + $0x58] sm:$0xf]  ;;  %v4091_v46 = vsub.f32 %v1845_v38, %v4075_v40 }
  0xf1   : > { %3251 = vmatpush3.msra.mxu1 %v918_v62  ;;  %3223 = vmatprep.subr.mxu0 %v3890_v14  ;;  %v4035_v23 = vand.u32 4294901760, %v4018_v17  ;;  %v4136_v62 = vsub.f32 %v1848_v51, %v4117_v55 }
  0xf2   : > { %3252 = vmatprep.subr.mxu1 %v925_v1  ;;  %3224 = vmatpush3.msra.mxu0 %v3890_v14  ;;  %v873_v14 = vsub.f32 %v3982_v3, %v872_v9  ;;  %v4024_v19 = vand.u32 4294901760, %v4006_v13  ;;  %v4109_v52 = vand.u32 4294901760, %v4091_v46 }
  0xf3   : > { %3253 = vmatpush3.msra.mxu1 %v925_v1  ;;  %3225 = vmatprep.subr.mxu0 %v3893_v15 }
  0xf4   : > { %3255 = vmatmul.mubr.f32.vlgmr.msra.gmra.mxu1 %v3972_v63  ;;  %3266 = vmatprep.subr.mxu1 %v3909_v28  ;;  %v874_v20 = vand.u32 4294901760, %v873_v14  ;;  %v1449_v25 = vsub.f32 %v4006_v13, %v4024_v19  ;;  %v1981_v58 = vsub.f32 %v4091_v46, %v4109_v52 }
  0xf5   : > { %3226 = vmatpush3.msra.mxu0 %v3893_v15  ;;  %3267 = vmatpush3.msra.mxu1 %v3909_v28  ;;  %v4011_v15 = vand.u32 4294901760, %v3996_v10 }
  0xf6   : > { %3272 = vmatprep.mubr.f32.mxu1 %v862_v2  ;;  %3228 = vmatmul.mubr.f32.vlgmr.msra.gmra.mxu0 %v3921_v37  ;;  %v1450_v31 = vand.u32 4294901760, %v1449_v25  ;;  %v1982_v0 = vand.u32 4294901760, %v1981_v58 }
  0xf7   : > { %3239 = vmatprep.subr.mxu0 %v3909_v28  ;;  %3268 = vmatprep.subr.mxu1 %v3915_v33  ;;  %v1442_v21 = vsub.f32 %v3996_v10, %v4011_v15 }
  0xf8   : > { %3240 = vmatpush3.msra.mxu0 %v3909_v28  ;;  %3245 = vmatprep.mubr.f32.mxu0 %v864_v11 }
  0xf9   : > { %3269 = vmatpush3.msra.mxu1 %v3915_v33  ;;  %3241 = vmatprep.subr.mxu0 %v3915_v33  ;;  %v1443_v26 = vand.u32 4294901760, %v1442_v21 }
  0xfa   : > { %3270 = vmatprep.subr.mxu1 %v3923_v39  ;;  %3242 = vmatpush3.msra.mxu0 %v3915_v33 }
  0xfb   : > { %3271 = vmatpush3.msra.mxu1 %v3923_v39  ;;  %3243 = vmatprep.subr.mxu0 %v3923_v39 }
  0xfc   : > { %3273 = vmatmul.mubr.f32.vlgmr.msra.gmra.mxu1 %v872_v9  ;;  %3284 = vmatprep.subr.mxu1 %v3909_v28 }
  0xfd   : > { %3244 = vmatpush3.msra.mxu0 %v3923_v39  ;;  %3285 = vmatpush3.msra.mxu1 %v3909_v28  ;;  %v1456_v28 = vsub.f32 %v4018_v17, %v4035_v23 }
  0xfe   : > { %3290 = vmatprep.mubr.f32.mxu1 %v3950_v53  ;;  %3246 = vmatmul.mubr.f32.vlgmr.msra.gmra.mxu0 %v874_v20  ;;  %v2380_v20 = vsel %vm249_vm5, %v2373_v18, 0 }
  0xff   : > { %3257 = vmatprep.subr.mxu0 %v3919_v36  ;;  %3286 = vmatprep.subr.mxu1 %v3915_v33  ;;  %v1457_v34 = vand.u32 4294901760, %v1456_v28  ;;  %v4202_v24 = vand.u32 4294901760, %v2380_v20 }
 0x100   : > { %3258 = vmatpush3.msra.mxu0 %v3919_v36  ;;  %3263 = vmatprep.mubr.f32.mxu0 %v3967_v60  ;;  %v4067_v36 = vsub.f32 %v1319_v27, %v4056_v32  ;;  %v1851_v60 = vsel %vm249_vm5, %v1842_v57, 0 }
 0x101   : > { %3287 = vmatpush3.msra.mxu1 %v3915_v33  ;;  %3259 = vmatprep.subr.mxu0 %v3928_v42  ;;  %v1854_v33 = vsel %vm256_vm3, %v1846_v30, 0  ;;  %v4141_v1 = vand.u32 4294901760, %v1851_v60 }
 0x102   : > { %3288 = vmatprep.subr.mxu1 %v3923_v39  ;;  %3260 = vmatpush3.msra.mxu0 %v3928_v42  ;;  %v4069_v37 = vand.u32 4294901760, %v1854_v33  ;;  %v1404_v42 = vand.u32 4294901760, %v4067_v36 }
 0x103   : > { %3289 = vmatpush3.msra.mxu1 %v3923_v39  ;;  %3261 = vmatprep.subr.mxu0 %v3937_v47  ;;  %v1395_v39 = vsub.f32 %v4051_v29, %v1394_v35  ;;  %v4152_v5 = vsub.f32 %v1851_v60, %v4141_v1 }
 0x104   : > { %3291 = vmatmul.mubr.f32.vlgmr.msra.gmra.mxu1 %v3972_v63  ;;  %3302 = vmatprep.subr.mxu1 %v1443_v26 }
 0x105   : > { %3262 = vmatpush3.msra.mxu0 %v3937_v47  ;;  %3303 = vmatpush3.msra.mxu1 %v1443_v26  ;;  %v1396_v44 = vand.u32 4294901760, %v1395_v39  ;;  %v1405_v47 = vsub.f32 %v4067_v36, %v1404_v42  ;;  %v1936_v11 = vand.u32 4294901760, %v4152_v5  ;;  %v2374_v26 = vld [vmem:[#allocation2 + $0xc] sm:$0xff] }
 0x106   : > { %3308 = vmatprep.mubr.f32.mxu1 %v4032_v22  ;;  %3264 = vmatmul.mubr.f32.vlgmr.msra.gmra.mxu0 %v3982_v3 }
 0x107   : > { %3275 = vmatprep.subr.mxu0 %v3932_v43  ;;  %3304 = vmatprep.subr.mxu1 %v1450_v31  ;;  %v1937_v16 = vsub.f32 %v4152_v5, %v1936_v11 }
 0x108   : > { %3276 = vmatpush3.msra.mxu0 %v3932_v43  ;;  %3281 = vmatprep.mubr.f32.mxu0 %v3950_v53  ;;  %v4081_v43 = vsub.f32 %v1854_v33, %v4069_v37  ;;  %v1406_v53 = vand.u32 4294901760, %v1405_v47 }
 0x109   : > { %3305 = vmatpush3.msra.mxu1 %v1450_v31  ;;  %3277 = vmatprep.subr.mxu0 %v3942_v50  ;;  %v2457_v31 = vsub.f32 %v2380_v20, %v4202_v24 }
 0x10a   : > { %3306 = vmatprep.subr.mxu1 %v1457_v34  ;;  %3278 = vmatpush3.msra.mxu0 %v3942_v50  ;;  %v4096_v48 = vand.u32 4294901760, %v4081_v43  ;;  %v4103_v50 = vsub.f32 %v1844_v41, %v4086_v45 }
 0x10b   : > { %3307 = vmatpush3.msra.mxu1 %v1457_v34  ;;  %3279 = vmatprep.subr.mxu0 %v3953_v54 }
 0x10c   : > { %3309 = vmatmul.mubr.f32.vlgmr.msra.gmra.mxu1 %v4056_v32  ;;  %3320 = vmatprep.subr.mxu1 %v3984_v4  ;;  %v4120_v56 = vand.u32 4294901760, %v4103_v50 }
 0x10d   : > { %3280 = vmatpush3.msra.mxu0 %v3953_v54  ;;  %3321 = vmatpush3.msra.mxu1 %v3984_v4  ;;  %v1974_v54 = vsub.f32 %v4081_v43, %v4096_v48 }
 0x10e   : > { %3326 = vmatprep.mubr.f32.mxu1 %v1394_v35  ;;  %3282 = vmatmul.mubr.f32.vlgmr.msra.gmra.mxu0 %v3972_v63  ;;  %v1988_v61 = vsub.f32 %v4103_v50, %v4120_v56  ;;  %v2378_v63 = vld [vmem:[#allocation6 + $0x70] sm:$0xf]  ;;  %v2458_v35 = vand.u32 4294901760, %v2457_v31 }
 0x10f   : > { %3293 = vmatprep.subr.mxu0 %v3984_v4  ;;  %3322 = vmatprep.subr.mxu1 %v3990_v7  ;;  %v1975_v59 = vand.u32 4294901760, %v1974_v54  ;;  %v2386_v2 = vsel %vm256_vm3, %v2378_v63, 0 }
 0x110   : > { %3294 = vmatpush3.msra.mxu0 %v3984_v4  ;;  %3299 = vmatprep.mubr.f32.mxu0 %v1396_v44  ;;  %v1989_v3 = vand.u32 4294901760, %v1988_v61  ;;  %v4154_v6 = vand.u32 4294901760, %v2386_v2 }
 0x111   : > { %3323 = vmatpush3.msra.mxu1 %v3990_v7  ;;  %3295 = vmatprep.subr.mxu0 %v3990_v7 }
 0x112   : > { %3324 = vmatprep.subr.mxu1 %v4001_v12  ;;  %3296 = vmatpush3.msra.mxu0 %v3990_v7 }
 0x113   : > { %3325 = vmatpush3.msra.mxu1 %v4001_v12  ;;  %3297 = vmatprep.subr.mxu0 %v4001_v12 }
 0x114   : > { %3327 = vmatmul.mubr.f32.vlgmr.msra.gmra.mxu1 %v1404_v42  ;;  %3338 = vmatprep.subr.mxu1 %v3984_v4 }
 0x115   : > { %3298 = vmatpush3.msra.mxu0 %v4001_v12  ;;  %3339 = vmatpush3.msra.mxu1 %v3984_v4  ;;  %v1926_v4 = vand.u32 4294901760, %v4136_v62 }
 0x116   : > { %3344 = vmatprep.mubr.f32.mxu1 %v4032_v22  ;;  %3300 = vmatmul.mubr.f32.vlgmr.msra.gmra.mxu0 %v1406_v53 }
 0x117   : > { %3311 = vmatprep.subr.mxu0 %v3996_v10  ;;  %3340 = vmatprep.subr.mxu1 %v3990_v7  ;;  %v1927_v8 = vsub.f32 %v4136_v62, %v1926_v4 }
 0x118   : > { %3312 = vmatpush3.msra.mxu0 %v3996_v10  ;;  %3317 = vmatprep.mubr.f32.mxu0 %v4051_v29  ;;  %v2376_v10 = vld [vmem:[#allocation6 + $0x60] sm:$0xff]  ;;  %v2383_v29 = vsel %vm249_vm5, %v2374_v26, 0 }
 0x119   : > { %3341 = vmatpush3.msra.mxu1 %v3990_v7  ;;  %3313 = vmatprep.subr.mxu0 %v4006_v13  ;;  %v2377_v7 = vld [vmem:[#allocation6 + $0x68] sm:$0xff]  ;;  %v4171_v14 = vand.u32 4294901760, %v2376_v10  ;;  %v4224_v33 = vand.u32 4294901760, %v2383_v29 }
 0x11a   : > { %3342 = vmatprep.subr.mxu1 %v4001_v12  ;;  %3314 = vmatpush3.msra.mxu0 %v4006_v13  ;;  %v4160_v9 = vand.u32 4294901760, %v2377_v7  ;;  %v1928_v13 = vand.u32 4294901760, %v1927_v8 }
 0x11b   : > { %3343 = vmatpush3.msra.mxu1 %v4001_v12  ;;  %3315 = vmatprep.subr.mxu0 %v4018_v17  ;;  %v4166_v12 = vsub.f32 %v2386_v2, %v4154_v6 }
 0x11c   : > { %3345 = vmatmul.mubr.f32.vlgmr.msra.gmra.mxu1 %v4056_v32  ;;  %3356 = vmatprep.subr.mxu1 %v1975_v59 }
 0x11d   : > { %3316 = vmatpush3.msra.mxu0 %v4018_v17  ;;  %3357 = vmatpush3.msra.mxu1 %v1975_v59  ;;  %v4181_v17 = vand.u32 4294901760, %v4166_v12 }
 0x11e   : > { %3362 = vmatprep.mubr.f32.mxu1 %v4117_v55  ;;  %3318 = vmatmul.mubr.f32.vlgmr.msra.gmra.mxu0 %v4067_v36  ;;  %v2467_v36 = vsub.f32 %v2383_v29, %v4224_v33 }
 0x11f   : > { %3329 = vmatprep.subr.mxu0 %v4011_v15  ;;  %3358 = vmatprep.subr.mxu1 %v1982_v0 }
 0x120   : > { %3330 = vmatpush3.msra.mxu0 %v4011_v15  ;;  %3335 = vmatprep.mubr.f32.mxu0 %v4032_v22  ;;  %v4176_v15 = vsub.f32 %v2377_v7, %v4160_v9  ;;  %v1938_v22 = vand.u32 4294901760, %v1937_v16  ;;  %v2468_v38 = vand.u32 4294901760, %v2467_v36 }
 0x121   : > { %3359 = vmatpush3.msra.mxu1 %v1982_v0  ;;  %3331 = vmatprep.subr.mxu0 %v4024_v19 }
 0x122   : > { %3360 = vmatprep.subr.mxu1 %v1989_v3  ;;  %3332 = vmatpush3.msra.mxu0 %v4024_v19  ;;  %v4188_v19 = vsub.f32 %v2376_v10, %v4171_v14  ;;  %v4194_v21 = vand.u32 4294901760, %v4176_v15 }
 0x123   : > { %3361 = vmatpush3.msra.mxu1 %v1989_v3  ;;  %3333 = vmatprep.subr.mxu0 %v4035_v23 }
 0x124   : > { %3363 = vmatmul.mubr.f32.vlgmr.msra.gmra.mxu1 %v4141_v1  ;;  %3374 = vmatprep.subr.mxu1 %v4069_v37  ;;  %v4205_v25 = vand.u32 4294901760, %v4188_v19  ;;  %v2513_v27 = vsub.f32 %v4176_v15, %v4194_v21 }
 0x125   : > { %3334 = vmatpush3.msra.mxu0 %v4035_v23  ;;  %3375 = vmatpush3.msra.mxu1 %v4069_v37  ;;  %v2506_v23 = vsub.f32 %v4166_v12, %v4181_v17 }
 0x126   : > { %3380 = vmatprep.mubr.f32.mxu1 %v1926_v4  ;;  %3336 = vmatmul.mubr.f32.vlgmr.msra.gmra.mxu0 %v4056_v32  ;;  %v2520_v30 = vsub.f32 %v4188_v19, %v4205_v25  ;;  %v2514_v32 = vand.u32 4294901760, %v2513_v27 }
 0x127   : > { %3347 = vmatprep.subr.mxu0 %v4069_v37  ;;  %3376 = vmatprep.subr.mxu1 %v4075_v40  ;;  %v2507_v28 = vand.u32 4294901760, %v2506_v23 }
 0x128   : > { %3348 = vmatpush3.msra.mxu0 %v4069_v37  ;;  %3353 = vmatprep.mubr.f32.mxu0 %v1928_v13  ;;  %v2521_v34 = vand.u32 4294901760, %v2520_v30 }
 0x129   : > { %3377 = vmatpush3.msra.mxu1 %v4075_v40  ;;  %3349 = vmatprep.subr.mxu0 %v4075_v40 }
 0x12a   : > { %3378 = vmatprep.subr.mxu1 %v4086_v45  ;;  %3350 = vmatpush3.msra.mxu0 %v4075_v40 }
 0x12b   : > { %3379 = vmatpush3.msra.mxu1 %v4086_v45  ;;  %3351 = vmatprep.subr.mxu0 %v4086_v45 }
 0x12c   : > { %3381 = vmatmul.mubr.f32.vlgmr.msra.gmra.mxu1 %v1936_v11  ;;  %3392 = vmatprep.subr.mxu1 %v4069_v37 }
 0x12d   : > { %3352 = vmatpush3.msra.mxu0 %v4086_v45  ;;  %3393 = vmatpush3.msra.mxu1 %v4069_v37  ;;  %v2459_v37 = vsub.f32 %v2457_v31, %v2458_v35 }
 0x12e   : > { %3398 = vmatprep.mubr.f32.mxu1 %v4117_v55  ;;  %3354 = vmatmul.mubr.f32.vlgmr.msra.gmra.mxu0 %v1938_v22 }
 0x12f   : > { %3365 = vmatprep.subr.mxu0 %v4081_v43  ;;  %3394 = vmatprep.subr.mxu1 %v4075_v40  ;;  %v2460_v39 = vand.u32 4294901760, %v2459_v37 }
 0x130   : > { %3366 = vmatpush3.msra.mxu0 %v4081_v43  ;;  %3371 = vmatprep.mubr.f32.mxu0 %v4136_v62 }
 0x131   : > { %3395 = vmatpush3.msra.mxu1 %v4075_v40  ;;  %3367 = vmatprep.subr.mxu0 %v4091_v46  ;;  %v2469_v40 = vsub.f32 %v2467_v36, %v2468_v38 }
 0x132   : > { %3396 = vmatprep.subr.mxu1 %v4086_v45  ;;  %3368 = vmatpush3.msra.mxu0 %v4091_v46 }
 0x133   : > { %3397 = vmatpush3.msra.mxu1 %v4086_v45  ;;  %3369 = vmatprep.subr.mxu0 %v4103_v50  ;;  %v2470_v41 = vand.u32 4294901760, %v2469_v40 }
 0x134   : > { %3399 = vmatmul.mubr.f32.vlgmr.msra.gmra.mxu1 %v4141_v1  ;;  %3410 = vmatprep.subr.mxu1 %v2507_v28 }
 0x135   : > { %3370 = vmatpush3.msra.mxu0 %v4103_v50  ;;  %3411 = vmatpush3.msra.mxu1 %v2507_v28 }
 0x136   : > { %3416 = vmatprep.mubr.f32.mxu1 %v4202_v24  ;;  %3372 = vmatmul.mubr.f32.vlgmr.msra.gmra.mxu0 %v4152_v5 }
 0x137   : > { %3383 = vmatprep.subr.mxu0 %v4096_v48  ;;  %3412 = vmatprep.subr.mxu1 %v2514_v32 }
 0x138   : > { %3384 = vmatpush3.msra.mxu0 %v4096_v48  ;;  %3389 = vmatprep.mubr.f32.mxu0 %v4117_v55 }
 0x139   : > { %3413 = vmatpush3.msra.mxu1 %v2514_v32  ;;  %3385 = vmatprep.subr.mxu0 %v4109_v52 }
 0x13a   : > { %3414 = vmatprep.subr.mxu1 %v2521_v34  ;;  %3386 = vmatpush3.msra.mxu0 %v4109_v52 }
 0x13b   : > { %3415 = vmatpush3.msra.mxu1 %v2521_v34  ;;  %3387 = vmatprep.subr.mxu0 %v4120_v56 }
 0x13c   : > { %3417 = vmatmul.mubr.f32.vlgmr.msra.gmra.mxu1 %v4224_v33  ;;  %3428 = vmatprep.subr.mxu1 %v4154_v6 }
 0x13d   : > { %3388 = vmatpush3.msra.mxu0 %v4120_v56  ;;  %3429 = vmatpush3.msra.mxu1 %v4154_v6 }
 0x13e   : > { %3434 = vmatprep.mubr.f32.mxu1 %v2458_v35  ;;  %3390 = vmatmul.mubr.f32.vlgmr.msra.gmra.mxu0 %v4141_v1 }
 0x13f   : > { %3401 = vmatprep.subr.mxu0 %v4154_v6  ;;  %3430 = vmatprep.subr.mxu1 %v4160_v9 }
 0x140   : > { %3402 = vmatpush3.msra.mxu0 %v4154_v6  ;;  %3407 = vmatprep.mubr.f32.mxu0 %v2460_v39 }
 0x141   : > { %3431 = vmatpush3.msra.mxu1 %v4160_v9  ;;  %3403 = vmatprep.subr.mxu0 %v4160_v9 }
 0x142   : > { %3432 = vmatprep.subr.mxu1 %v4171_v14  ;;  %3404 = vmatpush3.msra.mxu0 %v4160_v9 }
 0x143   : > { %3433 = vmatpush3.msra.mxu1 %v4171_v14  ;;  %3405 = vmatprep.subr.mxu0 %v4171_v14 }
 0x144   : > { %3435 = vmatmul.mubr.f32.vlgmr.msra.gmra.mxu1 %v2468_v38  ;;  %3446 = vmatprep.subr.mxu1 %v4154_v6 }
 0x145   : > { %3406 = vmatpush3.msra.mxu0 %v4171_v14  ;;  %3447 = vmatpush3.msra.mxu1 %v4154_v6 }
 0x146   : > { %3452 = vmatprep.mubr.f32.mxu1 %v4202_v24  ;;  %3408 = vmatmul.mubr.f32.vlgmr.msra.gmra.mxu0 %v2470_v41 }
 0x147   : > { %3419 = vmatprep.subr.mxu0 %v4166_v12  ;;  %3448 = vmatprep.subr.mxu1 %v4160_v9 }
 0x148   : > { %3420 = vmatpush3.msra.mxu0 %v4166_v12  ;;  %3425 = vmatprep.mubr.f32.mxu0 %v2457_v31 }
 0x149   : > { %3449 = vmatpush3.msra.mxu1 %v4160_v9  ;;  %3421 = vmatprep.subr.mxu0 %v4176_v15 }
 0x14a   : > { %3450 = vmatprep.subr.mxu1 %v4171_v14  ;;  %3422 = vmatpush3.msra.mxu0 %v4176_v15 }
 0x14b   : > { %3451 = vmatpush3.msra.mxu1 %v4171_v14  ;;  %3423 = vmatprep.subr.mxu0 %v4188_v19 }
 0x14c   : > { %3453 = vmatmul.mubr.f32.vlgmr.msra.gmra.mxu1 %v4224_v33  ;;  %3424 = vmatpush3.msra.mxu0 %v4188_v19 }
 0x14d   : > { %3426 = vmatmul.mubr.f32.vlgmr.msra.gmra.mxu0 %v2467_v36  ;;  %3437 = vmatprep.subr.mxu0 %v4181_v17 }
 0x14e   : > { %3438 = vmatpush3.msra.mxu0 %v4181_v17  ;;  %3443 = vmatprep.mubr.f32.mxu0 %v4202_v24 }
 0x14f   : > { %3439 = vmatprep.subr.mxu0 %v4194_v21 }
 0x150   : > { %3440 = vmatpush3.msra.mxu0 %v4194_v21 }
 0x151   : > { %3441 = vmatprep.subr.mxu0 %v4205_v25 }
 0x152   : > { %3442 = vmatpush3.msra.mxu0 %v4205_v25 }
 0x153   : > { %3444 = vmatmul.mubr.f32.vlgmr.msra.gmra.mxu0 %v4224_v33 }
 0x19f   : > { %v3202_v42 = vpop.f32.mrf.mxu1 }
 0x1a1   : > { %v430_v44 = vpop.f32.mrf.mxu1 }
 0x1a5   : > { %v3220_v46 = vpop.f32.mrf.mxu1 }
 0x1a7   : > { %v3193_v43 = vpop.f32.mrf.mxu0  ;;  %v597_v48 = vpop.f32.mrf.mxu1 }
 0x1a8   : > { %v437_v22 = vadd.f32 %v3202_v42, %v3193_v43 }
 0x1a9   : > { %v334_v45 = vpop.f32.mrf.mxu0 }
 0x1aa   : > { %v431_v23 = vadd.f32 %v430_v44, %v334_v45 }
 0x1ac   : > { %v4273_v50 = vpop.f32.mrf.mxu1 }
 0x1ae   : > { %v3211_v47 = vpop.f32.mrf.mxu0  ;;  %v4275_v52 = vpop.f32.mrf.mxu1 }
 0x1af   : > { %v522_v27 = vadd.f32 %v3211_v47, %v437_v22 }
 0x1b0   : > { %v514_v49 = vpop.f32.mrf.mxu0 }
 0x1b1   : > { %v515_v28 = vadd.f32 %v514_v49, %v431_v23  ;;  %v606_v36 = vadd.f32 %v3220_v46, %v522_v27 }
 0x1b3   : > { %v598_v39 = vadd.f32 %v597_v48, %v515_v28 }
 0x1b4   : > { %v3256_v54 = vpop.f32.mrf.mxu1 }
 0x1b6   : > { %v3229_v51 = vpop.f32.mrf.mxu0  ;;  %v962_v56 = vpop.f32.mrf.mxu1 }
 0x1b7   : > { %v692_v44 = vadd.f32 %v3229_v51, %v606_v36 }
 0x1b8   : > { %v685_v53 = vpop.f32.mrf.mxu0 }
 0x1b9   : > { %v686_v47 = vadd.f32 %v685_v53, %v598_v39  ;;  %v772_v46 = vadd.f32 %v4273_v50, %v692_v44 }
 0x1bc   : > { %v3274_v58 = vpop.f32.mrf.mxu1 }
 0x1be   : > { %v3247_v55 = vpop.f32.mrf.mxu0  ;;  %v1129_v60 = vpop.f32.mrf.mxu1 }
 0x1bf   : > { %v969_v24 = vadd.f32 %v3256_v54, %v3247_v55 }
 0x1c0   : > { %v866_v57 = vpop.f32.mrf.mxu0 }
 0x1c1   : > { %v963_v29 = vadd.f32 %v962_v56, %v866_v57 }
 0x1c4   : > { %v4277_v62 = vpop.f32.mrf.mxu1 }
 0x1c6   : > { %v3265_v59 = vpop.f32.mrf.mxu0  ;;  %v4279_v0 = vpop.f32.mrf.mxu1 }
 0x1c7   : > { %v1054_v30 = vadd.f32 %v3265_v59, %v969_v24 }
 0x1c8   : > { %v1046_v61 = vpop.f32.mrf.mxu0 }
 0x1c9   : > { %v1047_v32 = vadd.f32 %v1046_v61, %v963_v29  ;;  %v1138_v40 = vadd.f32 %v3274_v58, %v1054_v30 }
 0x1cb   : > { %v1130_v55 = vadd.f32 %v1129_v60, %v1047_v32 }
 0x1cc   : > { %v3310_v2 = vpop.f32.mrf.mxu1 }
 0x1ce   : > { %v3283_v63 = vpop.f32.mrf.mxu0  ;;  %v1494_v4 = vpop.f32.mrf.mxu1 }
 0x1cf   : > { %v1224_v49 = vadd.f32 %v3283_v63, %v1138_v40 }
 0x1d0   : > { %v1217_v1 = vpop.f32.mrf.mxu0 }
 0x1d1   : > { %v1218_v59 = vadd.f32 %v1217_v1, %v1130_v55  ;;  %v1304_v51 = vadd.f32 %v4277_v62, %v1224_v49 }
 0x1d4   : > { %v3328_v6 = vpop.f32.mrf.mxu1 }
 0x1d6   : > { %v3301_v3 = vpop.f32.mrf.mxu0  ;;  %v1661_v8 = vpop.f32.mrf.mxu1 }
 0x1d7   : > { %v1501_v31 = vadd.f32 %v3310_v2, %v3301_v3 }
 0x1d8   : > { %v1398_v5 = vpop.f32.mrf.mxu0 }
 0x1d9   : > { %v1495_v33 = vadd.f32 %v1494_v4, %v1398_v5  ;;  %v3027_v5 = vld [vmem:[#allocation3] ss:$0 sm:$0xff] }
 0x1dc   : > { %v4281_v10 = vpop.f32.mrf.mxu1 }
 0x1de   : > { %v3319_v7 = vpop.f32.mrf.mxu0  ;;  %v4283_v12 = vpop.f32.mrf.mxu1 }
 0x1df   : > { %v1586_v37 = vadd.f32 %v3319_v7, %v1501_v31  ;;  %v766_v7 = vadd.f32 %v4275_v52, %v686_v47 }
 0x1e0   : > { %v1578_v9 = vpop.f32.mrf.mxu0 }
 0x1e1   : > { %v1579_v41 = vadd.f32 %v1578_v9, %v1495_v33  ;;  %v1670_v56 = vadd.f32 %v3328_v6, %v1586_v37 }
 0x1e3   : > { %v1662_v61 = vadd.f32 %v1661_v8, %v1579_v41  ;;  %v1298_v8 = vadd.f32 %v4279_v0, %v1218_v59 }
 0x1e4   : > { %v3364_v14 = vpop.f32.mrf.mxu1 }
 0x1e6   : > { %v3337_v11 = vpop.f32.mrf.mxu0  ;;  %v2026_v16 = vpop.f32.mrf.mxu1 }
 0x1e7   : > { %v1756_v4 = vadd.f32 %v3337_v11, %v1670_v56 }
 0x1e8   : > { %v1749_v13 = vpop.f32.mrf.mxu0 }
 0x1e9   : > { %v1750_v9 = vadd.f32 %v1749_v13, %v1662_v61  ;;  %v1836_v50 = vadd.f32 %v4281_v10, %v1756_v4 }
 0x1eb   : > { %v1830_v62 = vadd.f32 %v4283_v12, %v1750_v9 }
 0x1ec   : > { %v3382_v18 = vpop.f32.mrf.mxu1 }
 0x1ee   : > { %v3355_v15 = vpop.f32.mrf.mxu0  ;;  %v2193_v20 = vpop.f32.mrf.mxu1 }
 0x1ef   : > { %v2033_v38 = vadd.f32 %v3364_v14, %v3355_v15 }
 0x1f0   : > { %v1930_v17 = vpop.f32.mrf.mxu0 }
 0x1f1   : > { %v2027_v45 = vadd.f32 %v2026_v16, %v1930_v17  ;;  %v776_v16 = vadd.f32 %v3027_v5, %v772_v46 }
 0x1f3   : > { %v1308_v52 = vadd.f32 %v1304_v51, %v776_v16 }
 0x1f4   : > { %v3400_v25 = vpop.f32.mrf.mxu1 }
 0x1f5   : > { %v1840_v24 = vadd.f32 %v1836_v50, %v1308_v52 }
 0x1f6   : > { %v3373_v19 = vpop.f32.mrf.mxu0  ;;  %v2361_v34 = vpop.f32.mrf.mxu1 }
 0x1f7   : > { %v2118_v54 = vadd.f32 %v3373_v19, %v2033_v38 }
 0x1f8   : > { %v2110_v21 = vpop.f32.mrf.mxu0 }
 0x1f9   : > { %v2111_v57 = vadd.f32 %v2110_v21, %v2027_v45  ;;  %v2202_v48 = vadd.f32 %v3382_v18, %v2118_v54  ;;  %v775_v18 = vadd.f32 %v3027_v5, %v766_v7 }
 0x1fb   : > { %v2194_v6 = vadd.f32 %v2193_v20, %v2111_v57  ;;  %v1307_v20 = vadd.f32 %v1298_v8, %v775_v18 }
 0x1fc   : > { %v3418_v42 = vpop.f32.mrf.mxu1 }
 0x1fd   : > { %v1839_v10 = vadd.f32 %v1830_v62, %v1307_v20 }
 0x1fe   : > { %v3391_v26 = vpop.f32.mrf.mxu0  ;;  %v2558_v2 = vpop.f32.mrf.mxu1 }
 0x1ff   : > { %v2288_v60 = vadd.f32 %v3391_v26, %v2202_v48 }
 0x200   : > { %v2281_v35 = vpop.f32.mrf.mxu0 }
 0x201   : > { %v2282_v11 = vadd.f32 %v2281_v35, %v2194_v6  ;;  %v2368_v13 = vadd.f32 %v3400_v25, %v2288_v60 }
 0x203   : > { %v2362_v0 = vadd.f32 %v2361_v34, %v2282_v11  ;;  %v2372_v29 = vadd.f32 %v2368_v13, %v1840_v24 }
 0x204   : > { %v3436_v53 = vpop.f32.mrf.mxu1 }
 0x205   : > { %v2371_v25 = vadd.f32 %v2362_v0, %v1839_v10 }
 0x206   : > { %v3409_v43 = vpop.f32.mrf.mxu0  ;;  %v2725_v19 = vpop.f32.mrf.mxu1 }
 0x207   : > { %v2565_v58 = vadd.f32 %v3418_v42, %v3409_v43 }
 0x208   : > { %v2462_v3 = vpop.f32.mrf.mxu0 }
 0x209   : > { %v2559_v14 = vadd.f32 %v2558_v2, %v2462_v3 }
 0x20c   : > { %v3454_v22 = vpop.f32.mrf.mxu1 }
 0x20d   : > { %v3427_v63 = vpop.f32.mrf.mxu0 }
 0x20e   : > { %v2650_v1 = vadd.f32 %v3427_v63, %v2565_v58  ;;  %v2893_v12 = vpop.f32.mrf.mxu1 }
 0x20f   : > { %v2642_v15 = vpop.f32.mrf.mxu0 }
 0x210   : > { %v2643_v17 = vadd.f32 %v2642_v15, %v2559_v14  ;;  %v2734_v21 = vadd.f32 %v3436_v53, %v2650_v1 }
 0x212   : > { %v2726_v27 = vadd.f32 %v2725_v19, %v2643_v17 }
 0x213   : > { %v3445_v23 = vpop.f32.mrf.mxu0 }
 0x214   : > { %v2820_v26 = vadd.f32 %v3445_v23, %v2734_v21 }
 0x215   : > { %v2813_v28 = vpop.f32.mrf.mxu0 }
 0x216   : > { %v2900_v30 = vadd.f32 %v3454_v22, %v2820_v26  ;;  %v2814_v31 = vadd.f32 %v2813_v28, %v2726_v27 }
 0x218   : > { %v2904_v32 = vadd.f32 %v2900_v30, %v2372_v29  ;;  %v2894_v33 = vadd.f32 %v2893_v12, %v2814_v31 }
 0x21a   : > { %2907 = vst.msk [vmem:[%s213_s9 + $0x8] sm:$0xff] %vm2905_vm6, %v2904_v32  ;;  %v2903_v34 = vadd.f32 %v2894_v33, %v2371_v25 }
 0x21c   : > { %2906 = vst.msk [vmem:[%s213_s9] sm:$0xff] %vm2905_vm6, %v2903_v34 }
 0x21d   : > { %3621 = shalt.err (!%p3618_p7)
}
 0x21e   : > { %s3622_s28 = scalar_lea.hbm %s4296_s20, 256  ;;  %s3626_s0 = scalar_lea.hbm %s4346_s3, 512 }
 0x21f   : > { %p3623_p11 = scmp.ne.s32.totalorder %s4296_s20, %s3622_s28  ;;  %p3627_p13 = scmp.lt.s32.totalorder %s4296_s20, %s4346_s3 }
 0x220   : > { %p3628_p0 = scmp.lt.s32.totalorder %s3626_s0, %s3622_s28 }
 0x221   : > { %p3624_p8 = pnand %p3623_p11, %p4367_p5 }
 0x222   : > { %p3629_p3 = por %p3628_p0, %p3627_p13 }
 0x223   : > { %p3625_p2 = pneg %p3624_p8 }
 0x225   : > { %p3630_p4 = pnand %p3629_p3, %p3625_p2 }
 0x227   : > { %3633 = shalt.err (!%p3630_p4)
}
 0x228   : > { %s3690_s17 = smov 128   ;;  %s3691_s19 = smov 8  }
 0x229   : > { %3465 = dma.vmem_to_hbm [thread:$0]  (%p4367_p5), %s4298_s29, 256, %s4296_s20, %s4302_s16, %s3690_s17, %s3690_s17, %s3691_s19  }
 0x22a PF: > { %s2937_s8 = sand.u32 1, %s3668_s12   ;;  %p4368_p9 = scmp.ne.s32.totalorder %s4355_s25, 0 }
 0x22b   : > { %p4369_p10 = scmp.ge.s32.totalorder %s3680_s15, 2  ;;  %s2938_s23 = scalar_lea.sflag [#allocation5], %s2937_s8 }
 0x22d   : > { %p3479_p1 = pnand %p4369_p10, %p4368_p9 }
 0x22f   : > { %p3480_p12 = pneg %p3479_p1 }
 0x231   : > { %3663 = dma.done.wait (%p3480_p12), %s2938_s23, 256  }
 0x232   : > { %3665 = vsyncadd (%p3480_p12), %s2938_s23, 4294967040  ;;  %p15_p6 = scmp.ge.s32.totalorder %s3737_s18, 4   ;;  %s4370_s12 = smov %s3672_s13 }
 0x233   : > { %s4371_s13 = smov %s3676_s14  ;;  %s4372_s14 = smov %s3749_s21 }
 0x234   : > { %s4373_s15 = smov %s3737_s18  ;;  %17 = sbr.rel (!%p15_p6) target bundleno = 7 (0x7), region = 88 }
 0x239   :  { %2943 = vsyncpa [#allocation4], 1 }
 0x23a   :  { %2945 = vsyncpa [#allocation4 + $0x1], 1 }
 0x23b   :  { %2946 = vsyncpa [#allocation7], 1 }
 0x23c   :  { %2947 = vsyncpa [#allocation5], 1 }
 0x23d   :  { %2949 = vsyncpa [#allocation5 + $0x1], 1 }

</bundles_post_ra>
